<compile_context>
chip_gen: v6e
topology: v6e:2x2x1
jax: 0.10.0
libtpu: 0.0.40
codegen_flags: <defaults>
</compile_context>

<pallas_src>
import math

import jax
import jax.numpy as jnp
from jax.experimental import pallas as pl
from jax.experimental.pallas import tpu as pltpu

NUM_HEAD = 8  # BaseMultiHeadAttention(num_head=8, num_feature=d_model)


def _mha_kernel(x_ref, wq_ref, wk_ref, wv_ref, wfc_ref, y_ref, attn_ref):
    S, D = x_ref.shape
    H = attn_ref.shape[0]
    dk = D // H
    inv_sqrt_dk = 1.0 / math.sqrt(dk)

    x = x_ref[...].astype(jnp.float32)

    # ---- Lane-dense projections: one (S,D)@(D,D) MXU dot each (no per-head split).
    q = jnp.dot(x, wq_ref[...], preferred_element_type=jnp.float32)   # (S, D)
    k = jnp.dot(x, wk_ref[...], preferred_element_type=jnp.float32)   # (S, D)
    v = jnp.dot(x, wv_ref[...], preferred_element_type=jnp.float32)   # (S, D)

    # ---- Per-head scaled-dot-product attention (static unroll over H heads).
    y_heads = []
    attn_heads = []
    for h in range(H):
        lo = h * dk
        qh = q[:, lo:lo + dk]                                          # (S, dk)
        kh = k[:, lo:lo + dk]
        vh = v[:, lo:lo + dk]
        scores = jax.lax.dot_general(
            qh, kh, (((1,), (1,)), ((), ())),
            preferred_element_type=jnp.float32) * inv_sqrt_dk          # (S, S)
        scores = scores - jnp.max(scores, axis=-1, keepdims=True)
        e = jnp.exp(scores)
        inv_den = pl.reciprocal(jnp.sum(e, axis=-1, keepdims=True), approx=True)
        attn_h = e * inv_den                                           # softmax rows
        # nn.Dropout(0.5) on attn: identity in eval mode.
        attn_heads.append(attn_h)
        y_heads.append(jnp.dot(attn_h, vh, preferred_element_type=jnp.float32))

    attn_ref[...] = jnp.stack(attn_heads, axis=0).astype(attn_ref.dtype)  # (H, S, S)

    # ---- concat heads -> single (S,D)@(D,D) fc matmul (Dropout in fc: identity).
    y_cat = jnp.concatenate(y_heads, axis=-1)                          # (S, D)
    y_ref[...] = jnp.dot(y_cat, wfc_ref[...],
                         preferred_element_type=jnp.float32).astype(y_ref.dtype)


def init_params(key, d_model, num_head=NUM_HEAD):
    """Deterministic synthetic parameters (torch nn.Linear-style uniform init)."""
    ks = jax.random.split(key, 4)

    def lin_w(k, out_f, in_f):
        bound = 1.0 / math.sqrt(in_f)
        return jax.random.uniform(k, (out_f, in_f), jnp.float32, -bound, bound)

    Wq = lin_w(ks[0], d_model, d_model)     # self.Q.weight (out, in), bias=False
    Wk = lin_w(ks[1], d_model, d_model)     # self.K.weight
    Wv = lin_w(ks[2], d_model, d_model)     # self.V.weight
    Wfc = lin_w(ks[3], d_model, d_model)    # self.fc[0].weight

    # Glue: pre-transpose so the kernel does lane-dense `x @ W` dots.
    return dict(wq_t=Wq.T, wk_t=Wk.T, wv_t=Wv.T, wfc_t=Wfc.T)


def base_mha_forward(x, params, num_head=NUM_HEAD):
    """x: (1, seq_len, d_model) float32 -> (y (1,S,D), attn (H,S,S))."""
    assert x.shape[0] == 1, "BaseMultiHeadAttention reshape requires batch == 1"
    _, S, D = x.shape
    x2 = x[0]

    vmem = pl.BlockSpec(memory_space=pltpu.MemorySpace.VMEM)
    y, attn = pl.pallas_call(
        _mha_kernel,
        out_shape=(jax.ShapeDtypeStruct((S, D), jnp.float32),            # y
                   jax.ShapeDtypeStruct((num_head, S, S), jnp.float32)), # attn
        in_specs=[vmem] * 5,
        out_specs=(vmem, vmem),
    )(x2, params["wq_t"], params["wk_t"], params["wv_t"], params["wfc_t"])
    return y.reshape(1, S, D), attn


def _reference(x2, p, num_head=NUM_HEAD):
    """Pure-JAX reference mirroring the PyTorch forward (eval mode)."""
    S, D = x2.shape
    dk = D // num_head
    q = x2 @ p["wq_t"]
    k = x2 @ p["wk_t"]
    v = x2 @ p["wv_t"]
    qh = q.reshape(S, num_head, dk).transpose(1, 0, 2)
    kh = k.reshape(S, num_head, dk).transpose(1, 0, 2)
    vh = v.reshape(S, num_head, dk).transpose(1, 0, 2)
    scores = jnp.einsum('hqd,hkd->hqk', qh, kh) / math.sqrt(dk)
    attn = jax.nn.softmax(scores, axis=-1)
    y = jnp.einsum('hqk,hkd->hqd', attn, vh)
    y = (y.transpose(1, 0, 2).reshape(S, D)) @ p["wfc_t"]
    return y.reshape(1, S, D), attn


if __name__ == "__main__":
    d_model, seq_len = 32, 8
    key = jax.random.PRNGKey(0)
    kx, kp = jax.random.split(key)
    x = jax.random.normal(kx, (1, seq_len, d_model), jnp.float32)
    params = init_params(kp, d_model)

    y, attn = base_mha_forward(x, params)
    jax.block_until_ready((y, attn))

    assert y.shape == (1, seq_len, d_model)
    assert attn.shape == (NUM_HEAD, seq_len, seq_len)
    assert bool(jnp.all(jnp.isfinite(y))) and bool(jnp.all(jnp.isfinite(attn)))

    y_ref, attn_ref = _reference(x[0], params)
    # approx-reciprocal softmax denominator -> loose-but-tight-enough tolerance
    assert float(jnp.max(jnp.abs(y - y_ref))) < 1e-2
    assert float(jnp.max(jnp.abs(attn - attn_ref))) < 1e-2
    # softmax rows sum to ~1
    assert float(jnp.max(jnp.abs(jnp.sum(attn, axis=-1) - 1.0))) < 1e-2

    print("KERNEL_OK")
</pallas_src>

<mosaic_0001>
module attributes {stable_mosaic.version = 11 : i64} {
  func.func @_mha_kernel(%arg0: memref<8x32xf32, #tpu.memory_space<vmem>>, %arg1: memref<32x32xf32, #tpu.memory_space<vmem>>, %arg2: memref<32x32xf32, #tpu.memory_space<vmem>>, %arg3: memref<32x32xf32, #tpu.memory_space<vmem>>, %arg4: memref<32x32xf32, #tpu.memory_space<vmem>>, %arg5: memref<8x32xf32, #tpu.memory_space<vmem>>, %arg6: memref<8x8x8xf32, #tpu.memory_space<vmem>>) attributes {dimension_semantics = [], scalar_prefetch = 0 : i64, scratch_operands = 0 : i64, tpu.core_type = #tpu.core_type<tc>} {
    %c0 = arith.constant 0 : index
    %c0_0 = arith.constant 0 : index
    %0 = vector.load %arg0[%c0, %c0_0] : memref<8x32xf32, #tpu.memory_space<vmem>>, vector<8x32xf32>
    %c0_1 = arith.constant 0 : index
    %c0_2 = arith.constant 0 : index
    %1 = vector.load %arg1[%c0_1, %c0_2] : memref<32x32xf32, #tpu.memory_space<vmem>>, vector<32x32xf32>
    %cst = arith.constant dense<0.000000e+00> : vector<8x32xf32>
    %2 = tpu.matmul %0, %1, %cst {dimension_numbers = #tpu.dot_dimension_numbers<[1], [0], [0], [1], [0, 0, 1, 1], [], []>} : vector<8x32xf32>, vector<32x32xf32>, vector<8x32xf32> -> vector<8x32xf32>
    %c0_3 = arith.constant 0 : index
    %c0_4 = arith.constant 0 : index
    %3 = vector.load %arg2[%c0_3, %c0_4] : memref<32x32xf32, #tpu.memory_space<vmem>>, vector<32x32xf32>
    %cst_5 = arith.constant dense<0.000000e+00> : vector<8x32xf32>
    %4 = tpu.matmul %0, %3, %cst_5 {dimension_numbers = #tpu.dot_dimension_numbers<[1], [0], [0], [1], [0, 0, 1, 1], [], []>} : vector<8x32xf32>, vector<32x32xf32>, vector<8x32xf32> -> vector<8x32xf32>
    %c0_6 = arith.constant 0 : index
    %c0_7 = arith.constant 0 : index
    %5 = vector.load %arg3[%c0_6, %c0_7] : memref<32x32xf32, #tpu.memory_space<vmem>>, vector<32x32xf32>
    %cst_8 = arith.constant dense<0.000000e+00> : vector<8x32xf32>
    %6 = tpu.matmul %0, %5, %cst_8 {dimension_numbers = #tpu.dot_dimension_numbers<[1], [0], [0], [1], [0, 0, 1, 1], [], []>} : vector<8x32xf32>, vector<32x32xf32>, vector<8x32xf32> -> vector<8x32xf32>
    %7 = vector.extract_strided_slice %2 {offsets = [0, 0], sizes = [8, 4], strides = [1, 1]} : vector<8x32xf32> to vector<8x4xf32>
    %8 = vector.extract_strided_slice %4 {offsets = [0, 0], sizes = [8, 4], strides = [1, 1]} : vector<8x32xf32> to vector<8x4xf32>
    %9 = vector.extract_strided_slice %6 {offsets = [0, 0], sizes = [8, 4], strides = [1, 1]} : vector<8x32xf32> to vector<8x4xf32>
    %cst_9 = arith.constant dense<0.000000e+00> : vector<8x8xf32>
    %10 = tpu.matmul %7, %8, %cst_9 {dimension_numbers = #tpu.dot_dimension_numbers<[1], [1], [0], [0], [0, 0, 1, 0], [], []>} : vector<8x4xf32>, vector<8x4xf32>, vector<8x8xf32> -> vector<8x8xf32>
    %cst_10 = arith.constant 5.000000e-01 : f32
    %11 = vector.broadcast %cst_10 : f32 to vector<8x8xf32>
    %12 = arith.mulf %10, %11 : vector<8x8xf32>
    %cst_11 = arith.constant dense<0xFF800000> : vector<8xf32>
    %13 = vector.multi_reduction <maximumf>, %12, %cst_11 [1] : vector<8x8xf32> to vector<8xf32>
    %14 = vector.shape_cast %13 : vector<8xf32> to vector<8x1xf32>
    %15 = vector.broadcast %14 : vector<8x1xf32> to vector<8x8xf32>
    %16 = arith.subf %12, %15 : vector<8x8xf32>
    %17 = math.exp %16 : vector<8x8xf32>
    %cst_12 = arith.constant dense<0.000000e+00> : vector<8xf32>
    %18 = vector.multi_reduction <add>, %17, %cst_12 [1] : vector<8x8xf32> to vector<8xf32>
    %19 = vector.shape_cast %18 : vector<8xf32> to vector<8x1xf32>
    %20 = tpu.reciprocal %19 {approx = true} : vector<8x1xf32> -> vector<8x1xf32>
    %21 = vector.broadcast %20 : vector<8x1xf32> to vector<8x8xf32>
    %22 = arith.mulf %17, %21 : vector<8x8xf32>
    %cst_13 = arith.constant dense<0.000000e+00> : vector<8x4xf32>
    %23 = tpu.matmul %22, %9, %cst_13 {dimension_numbers = #tpu.dot_dimension_numbers<[1], [0], [0], [1], [0, 0, 1, 1], [], []>} : vector<8x8xf32>, vector<8x4xf32>, vector<8x4xf32> -> vector<8x4xf32>
    %24 = vector.extract_strided_slice %2 {offsets = [0, 4], sizes = [8, 4], strides = [1, 1]} : vector<8x32xf32> to vector<8x4xf32>
    %25 = vector.extract_strided_slice %4 {offsets = [0, 4], sizes = [8, 4], strides = [1, 1]} : vector<8x32xf32> to vector<8x4xf32>
    %26 = vector.extract_strided_slice %6 {offsets = [0, 4], sizes = [8, 4], strides = [1, 1]} : vector<8x32xf32> to vector<8x4xf32>
    %cst_14 = arith.constant dense<0.000000e+00> : vector<8x8xf32>
    %27 = tpu.matmul %24, %25, %cst_14 {dimension_numbers = #tpu.dot_dimension_numbers<[1], [1], [0], [0], [0, 0, 1, 0], [], []>} : vector<8x4xf32>, vector<8x4xf32>, vector<8x8xf32> -> vector<8x8xf32>
    %cst_15 = arith.constant 5.000000e-01 : f32
    %28 = vector.broadcast %cst_15 : f32 to vector<8x8xf32>
    %29 = arith.mulf %27, %28 : vector<8x8xf32>
    %cst_16 = arith.constant dense<0xFF800000> : vector<8xf32>
    %30 = vector.multi_reduction <maximumf>, %29, %cst_16 [1] : vector<8x8xf32> to vector<8xf32>
    %31 = vector.shape_cast %30 : vector<8xf32> to vector<8x1xf32>
    %32 = vector.broadcast %31 : vector<8x1xf32> to vector<8x8xf32>
    %33 = arith.subf %29, %32 : vector<8x8xf32>
    %34 = math.exp %33 : vector<8x8xf32>
    %cst_17 = arith.constant dense<0.000000e+00> : vector<8xf32>
    %35 = vector.multi_reduction <add>, %34, %cst_17 [1] : vector<8x8xf32> to vector<8xf32>
    %36 = vector.shape_cast %35 : vector<8xf32> to vector<8x1xf32>
    %37 = tpu.reciprocal %36 {approx = true} : vector<8x1xf32> -> vector<8x1xf32>
    %38 = vector.broadcast %37 : vector<8x1xf32> to vector<8x8xf32>
    %39 = arith.mulf %34, %38 : vector<8x8xf32>
    %cst_18 = arith.constant dense<0.000000e+00> : vector<8x4xf32>
    %40 = tpu.matmul %39, %26, %cst_18 {dimension_numbers = #tpu.dot_dimension_numbers<[1], [0], [0], [1], [0, 0, 1, 1], [], []>} : vector<8x8xf32>, vector<8x4xf32>, vector<8x4xf32> -> vector<8x4xf32>
    %41 = vector.extract_strided_slice %2 {offsets = [0, 8], sizes = [8, 4], strides = [1, 1]} : vector<8x32xf32> to vector<8x4xf32>
    %42 = vector.extract_strided_slice %4 {offsets = [0, 8], sizes = [8, 4], strides = [1, 1]} : vector<8x32xf32> to vector<8x4xf32>
    %43 = vector.extract_strided_slice %6 {offsets = [0, 8], sizes = [8, 4], strides = [1, 1]} : vector<8x32xf32> to vector<8x4xf32>
    %cst_19 = arith.constant dense<0.000000e+00> : vector<8x8xf32>
    %44 = tpu.matmul %41, %42, %cst_19 {dimension_numbers = #tpu.dot_dimension_numbers<[1], [1], [0], [0], [0, 0, 1, 0], [], []>} : vector<8x4xf32>, vector<8x4xf32>, vector<8x8xf32> -> vector<8x8xf32>
    %cst_20 = arith.constant 5.000000e-01 : f32
    %45 = vector.broadcast %cst_20 : f32 to vector<8x8xf32>
    %46 = arith.mulf %44, %45 : vector<8x8xf32>
    %cst_21 = arith.constant dense<0xFF800000> : vector<8xf32>
    %47 = vector.multi_reduction <maximumf>, %46, %cst_21 [1] : vector<8x8xf32> to vector<8xf32>
    %48 = vector.shape_cast %47 : vector<8xf32> to vector<8x1xf32>
    %49 = vector.broadcast %48 : vector<8x1xf32> to vector<8x8xf32>
    %50 = arith.subf %46, %49 : vector<8x8xf32>
    %51 = math.exp %50 : vector<8x8xf32>
    %cst_22 = arith.constant dense<0.000000e+00> : vector<8xf32>
    %52 = vector.multi_reduction <add>, %51, %cst_22 [1] : vector<8x8xf32> to vector<8xf32>
    %53 = vector.shape_cast %52 : vector<8xf32> to vector<8x1xf32>
    %54 = tpu.reciprocal %53 {approx = true} : vector<8x1xf32> -> vector<8x1xf32>
    %55 = vector.broadcast %54 : vector<8x1xf32> to vector<8x8xf32>
    %56 = arith.mulf %51, %55 : vector<8x8xf32>
    %cst_23 = arith.constant dense<0.000000e+00> : vector<8x4xf32>
    %57 = tpu.matmul %56, %43, %cst_23 {dimension_numbers = #tpu.dot_dimension_numbers<[1], [0], [0], [1], [0, 0, 1, 1], [], []>} : vector<8x8xf32>, vector<8x4xf32>, vector<8x4xf32> -> vector<8x4xf32>
    %58 = vector.extract_strided_slice %2 {offsets = [0, 12], sizes = [8, 4], strides = [1, 1]} : vector<8x32xf32> to vector<8x4xf32>
    %59 = vector.extract_strided_slice %4 {offsets = [0, 12], sizes = [8, 4], strides = [1, 1]} : vector<8x32xf32> to vector<8x4xf32>
    %60 = vector.extract_strided_slice %6 {offsets = [0, 12], sizes = [8, 4], strides = [1, 1]} : vector<8x32xf32> to vector<8x4xf32>
    %cst_24 = arith.constant dense<0.000000e+00> : vector<8x8xf32>
    %61 = tpu.matmul %58, %59, %cst_24 {dimension_numbers = #tpu.dot_dimension_numbers<[1], [1], [0], [0], [0, 0, 1, 0], [], []>} : vector<8x4xf32>, vector<8x4xf32>, vector<8x8xf32> -> vector<8x8xf32>
    %cst_25 = arith.constant 5.000000e-01 : f32
    %62 = vector.broadcast %cst_25 : f32 to vector<8x8xf32>
    %63 = arith.mulf %61, %62 : vector<8x8xf32>
    %cst_26 = arith.constant dense<0xFF800000> : vector<8xf32>
    %64 = vector.multi_reduction <maximumf>, %63, %cst_26 [1] : vector<8x8xf32> to vector<8xf32>
    %65 = vector.shape_cast %64 : vector<8xf32> to vector<8x1xf32>
    %66 = vector.broadcast %65 : vector<8x1xf32> to vector<8x8xf32>
    %67 = arith.subf %63, %66 : vector<8x8xf32>
    %68 = math.exp %67 : vector<8x8xf32>
    %cst_27 = arith.constant dense<0.000000e+00> : vector<8xf32>
    %69 = vector.multi_reduction <add>, %68, %cst_27 [1] : vector<8x8xf32> to vector<8xf32>
    %70 = vector.shape_cast %69 : vector<8xf32> to vector<8x1xf32>
    %71 = tpu.reciprocal %70 {approx = true} : vector<8x1xf32> -> vector<8x1xf32>
    %72 = vector.broadcast %71 : vector<8x1xf32> to vector<8x8xf32>
    %73 = arith.mulf %68, %72 : vector<8x8xf32>
    %cst_28 = arith.constant dense<0.000000e+00> : vector<8x4xf32>
    %74 = tpu.matmul %73, %60, %cst_28 {dimension_numbers = #tpu.dot_dimension_numbers<[1], [0], [0], [1], [0, 0, 1, 1], [], []>} : vector<8x8xf32>, vector<8x4xf32>, vector<8x4xf32> -> vector<8x4xf32>
    %75 = vector.extract_strided_slice %2 {offsets = [0, 16], sizes = [8, 4], strides = [1, 1]} : vector<8x32xf32> to vector<8x4xf32>
    %76 = vector.extract_strided_slice %4 {offsets = [0, 16], sizes = [8, 4], strides = [1, 1]} : vector<8x32xf32> to vector<8x4xf32>
    %77 = vector.extract_strided_slice %6 {offsets = [0, 16], sizes = [8, 4], strides = [1, 1]} : vector<8x32xf32> to vector<8x4xf32>
    %cst_29 = arith.constant dense<0.000000e+00> : vector<8x8xf32>
    %78 = tpu.matmul %75, %76, %cst_29 {dimension_numbers = #tpu.dot_dimension_numbers<[1], [1], [0], [0], [0, 0, 1, 0], [], []>} : vector<8x4xf32>, vector<8x4xf32>, vector<8x8xf32> -> vector<8x8xf32>
    %cst_30 = arith.constant 5.000000e-01 : f32
    %79 = vector.broadcast %cst_30 : f32 to vector<8x8xf32>
    %80 = arith.mulf %78, %79 : vector<8x8xf32>
    %cst_31 = arith.constant dense<0xFF800000> : vector<8xf32>
    %81 = vector.multi_reduction <maximumf>, %80, %cst_31 [1] : vector<8x8xf32> to vector<8xf32>
    %82 = vector.shape_cast %81 : vector<8xf32> to vector<8x1xf32>
    %83 = vector.broadcast %82 : vector<8x1xf32> to vector<8x8xf32>
    %84 = arith.subf %80, %83 : vector<8x8xf32>
    %85 = math.exp %84 : vector<8x8xf32>
    %cst_32 = arith.constant dense<0.000000e+00> : vector<8xf32>
    %86 = vector.multi_reduction <add>, %85, %cst_32 [1] : vector<8x8xf32> to vector<8xf32>
    %87 = vector.shape_cast %86 : vector<8xf32> to vector<8x1xf32>
    %88 = tpu.reciprocal %87 {approx = true} : vector<8x1xf32> -> vector<8x1xf32>
    %89 = vector.broadcast %88 : vector<8x1xf32> to vector<8x8xf32>
    %90 = arith.mulf %85, %89 : vector<8x8xf32>
    %cst_33 = arith.constant dense<0.000000e+00> : vector<8x4xf32>
    %91 = tpu.matmul %90, %77, %cst_33 {dimension_numbers = #tpu.dot_dimension_numbers<[1], [0], [0], [1], [0, 0, 1, 1], [], []>} : vector<8x8xf32>, vector<8x4xf32>, vector<8x4xf32> -> vector<8x4xf32>
    %92 = vector.extract_strided_slice %2 {offsets = [0, 20], sizes = [8, 4], strides = [1, 1]} : vector<8x32xf32> to vector<8x4xf32>
    %93 = vector.extract_strided_slice %4 {offsets = [0, 20], sizes = [8, 4], strides = [1, 1]} : vector<8x32xf32> to vector<8x4xf32>
    %94 = vector.extract_strided_slice %6 {offsets = [0, 20], sizes = [8, 4], strides = [1, 1]} : vector<8x32xf32> to vector<8x4xf32>
    %cst_34 = arith.constant dense<0.000000e+00> : vector<8x8xf32>
    %95 = tpu.matmul %92, %93, %cst_34 {dimension_numbers = #tpu.dot_dimension_numbers<[1], [1], [0], [0], [0, 0, 1, 0], [], []>} : vector<8x4xf32>, vector<8x4xf32>, vector<8x8xf32> -> vector<8x8xf32>
    %cst_35 = arith.constant 5.000000e-01 : f32
    %96 = vector.broadcast %cst_35 : f32 to vector<8x8xf32>
    %97 = arith.mulf %95, %96 : vector<8x8xf32>
    %cst_36 = arith.constant dense<0xFF800000> : vector<8xf32>
    %98 = vector.multi_reduction <maximumf>, %97, %cst_36 [1] : vector<8x8xf32> to vector<8xf32>
    %99 = vector.shape_cast %98 : vector<8xf32> to vector<8x1xf32>
    %100 = vector.broadcast %99 : vector<8x1xf32> to vector<8x8xf32>
    %101 = arith.subf %97, %100 : vector<8x8xf32>
    %102 = math.exp %101 : vector<8x8xf32>
    %cst_37 = arith.constant dense<0.000000e+00> : vector<8xf32>
    %103 = vector.multi_reduction <add>, %102, %cst_37 [1] : vector<8x8xf32> to vector<8xf32>
    %104 = vector.shape_cast %103 : vector<8xf32> to vector<8x1xf32>
    %105 = tpu.reciprocal %104 {approx = true} : vector<8x1xf32> -> vector<8x1xf32>
    %106 = vector.broadcast %105 : vector<8x1xf32> to vector<8x8xf32>
    %107 = arith.mulf %102, %106 : vector<8x8xf32>
    %cst_38 = arith.constant dense<0.000000e+00> : vector<8x4xf32>
    %108 = tpu.matmul %107, %94, %cst_38 {dimension_numbers = #tpu.dot_dimension_numbers<[1], [0], [0], [1], [0, 0, 1, 1], [], []>} : vector<8x8xf32>, vector<8x4xf32>, vector<8x4xf32> -> vector<8x4xf32>
    %109 = vector.extract_strided_slice %2 {offsets = [0, 24], sizes = [8, 4], strides = [1, 1]} : vector<8x32xf32> to vector<8x4xf32>
    %110 = vector.extract_strided_slice %4 {offsets = [0, 24], sizes = [8, 4], strides = [1, 1]} : vector<8x32xf32> to vector<8x4xf32>
    %111 = vector.extract_strided_slice %6 {offsets = [0, 24], sizes = [8, 4], strides = [1, 1]} : vector<8x32xf32> to vector<8x4xf32>
    %cst_39 = arith.constant dense<0.000000e+00> : vector<8x8xf32>
    %112 = tpu.matmul %109, %110, %cst_39 {dimension_numbers = #tpu.dot_dimension_numbers<[1], [1], [0], [0], [0, 0, 1, 0], [], []>} : vector<8x4xf32>, vector<8x4xf32>, vector<8x8xf32> -> vector<8x8xf32>
    %cst_40 = arith.constant 5.000000e-01 : f32
    %113 = vector.broadcast %cst_40 : f32 to vector<8x8xf32>
    %114 = arith.mulf %112, %113 : vector<8x8xf32>
    %cst_41 = arith.constant dense<0xFF800000> : vector<8xf32>
    %115 = vector.multi_reduction <maximumf>, %114, %cst_41 [1] : vector<8x8xf32> to vector<8xf32>
    %116 = vector.shape_cast %115 : vector<8xf32> to vector<8x1xf32>
    %117 = vector.broadcast %116 : vector<8x1xf32> to vector<8x8xf32>
    %118 = arith.subf %114, %117 : vector<8x8xf32>
    %119 = math.exp %118 : vector<8x8xf32>
    %cst_42 = arith.constant dense<0.000000e+00> : vector<8xf32>
    %120 = vector.multi_reduction <add>, %119, %cst_42 [1] : vector<8x8xf32> to vector<8xf32>
    %121 = vector.shape_cast %120 : vector<8xf32> to vector<8x1xf32>
    %122 = tpu.reciprocal %121 {approx = true} : vector<8x1xf32> -> vector<8x1xf32>
    %123 = vector.broadcast %122 : vector<8x1xf32> to vector<8x8xf32>
    %124 = arith.mulf %119, %123 : vector<8x8xf32>
    %cst_43 = arith.constant dense<0.000000e+00> : vector<8x4xf32>
    %125 = tpu.matmul %124, %111, %cst_43 {dimension_numbers = #tpu.dot_dimension_numbers<[1], [0], [0], [1], [0, 0, 1, 1], [], []>} : vector<8x8xf32>, vector<8x4xf32>, vector<8x4xf32> -> vector<8x4xf32>
    %126 = vector.extract_strided_slice %2 {offsets = [0, 28], sizes = [8, 4], strides = [1, 1]} : vector<8x32xf32> to vector<8x4xf32>
    %127 = vector.extract_strided_slice %4 {offsets = [0, 28], sizes = [8, 4], strides = [1, 1]} : vector<8x32xf32> to vector<8x4xf32>
    %128 = vector.extract_strided_slice %6 {offsets = [0, 28], sizes = [8, 4], strides = [1, 1]} : vector<8x32xf32> to vector<8x4xf32>
    %cst_44 = arith.constant dense<0.000000e+00> : vector<8x8xf32>
    %129 = tpu.matmul %126, %127, %cst_44 {dimension_numbers = #tpu.dot_dimension_numbers<[1], [1], [0], [0], [0, 0, 1, 0], [], []>} : vector<8x4xf32>, vector<8x4xf32>, vector<8x8xf32> -> vector<8x8xf32>
    %cst_45 = arith.constant 5.000000e-01 : f32
    %130 = vector.broadcast %cst_45 : f32 to vector<8x8xf32>
    %131 = arith.mulf %129, %130 : vector<8x8xf32>
    %cst_46 = arith.constant dense<0xFF800000> : vector<8xf32>
    %132 = vector.multi_reduction <maximumf>, %131, %cst_46 [1] : vector<8x8xf32> to vector<8xf32>
    %133 = vector.shape_cast %132 : vector<8xf32> to vector<8x1xf32>
    %134 = vector.broadcast %133 : vector<8x1xf32> to vector<8x8xf32>
    %135 = arith.subf %131, %134 : vector<8x8xf32>
    %136 = math.exp %135 : vector<8x8xf32>
    %cst_47 = arith.constant dense<0.000000e+00> : vector<8xf32>
    %137 = vector.multi_reduction <add>, %136, %cst_47 [1] : vector<8x8xf32> to vector<8xf32>
    %138 = vector.shape_cast %137 : vector<8xf32> to vector<8x1xf32>
    %139 = tpu.reciprocal %138 {approx = true} : vector<8x1xf32> -> vector<8x1xf32>
    %140 = vector.broadcast %139 : vector<8x1xf32> to vector<8x8xf32>
    %141 = arith.mulf %136, %140 : vector<8x8xf32>
    %cst_48 = arith.constant dense<0.000000e+00> : vector<8x4xf32>
    %142 = tpu.matmul %141, %128, %cst_48 {dimension_numbers = #tpu.dot_dimension_numbers<[1], [0], [0], [1], [0, 0, 1, 1], [], []>} : vector<8x8xf32>, vector<8x4xf32>, vector<8x4xf32> -> vector<8x4xf32>
    %143 = vector.shape_cast %22 : vector<8x8xf32> to vector<1x8x8xf32>
    %144 = vector.shape_cast %39 : vector<8x8xf32> to vector<1x8x8xf32>
    %145 = vector.shape_cast %56 : vector<8x8xf32> to vector<1x8x8xf32>
    %146 = vector.shape_cast %73 : vector<8x8xf32> to vector<1x8x8xf32>
    %147 = vector.shape_cast %90 : vector<8x8xf32> to vector<1x8x8xf32>
    %148 = vector.shape_cast %107 : vector<8x8xf32> to vector<1x8x8xf32>
    %149 = vector.shape_cast %124 : vector<8x8xf32> to vector<1x8x8xf32>
    %150 = vector.shape_cast %141 : vector<8x8xf32> to vector<1x8x8xf32>
    %151 = tpu.concatenate %143, %144, %145, %146, %147, %148, %149, %150 in 0 : vector<1x8x8xf32>, vector<1x8x8xf32>, vector<1x8x8xf32>, vector<1x8x8xf32>, vector<1x8x8xf32>, vector<1x8x8xf32>, vector<1x8x8xf32>, vector<1x8x8xf32> -> vector<8x8x8xf32>
    %c0_49 = arith.constant 0 : index
    %c0_50 = arith.constant 0 : index
    %c0_51 = arith.constant 0 : index
    %152 = vector.load %arg6[%c0_49, %c0_50, %c0_51] : memref<8x8x8xf32, #tpu.memory_space<vmem>>, vector<8x8x8xf32>
    tpu.vector_store %arg6[%c0_49, %c0_50, %c0_51], %151 {strides = array<i32>} : memref<8x8x8xf32, #tpu.memory_space<vmem>>, vector<8x8x8xf32>,
    %153 = tpu.concatenate %23, %40, %57, %74, %91, %108, %125, %142 in 1 : vector<8x4xf32>, vector<8x4xf32>, vector<8x4xf32>, vector<8x4xf32>, vector<8x4xf32>, vector<8x4xf32>, vector<8x4xf32>, vector<8x4xf32> -> vector<8x32xf32>
    %c0_52 = arith.constant 0 : index
    %c0_53 = arith.constant 0 : index
    %154 = vector.load %arg4[%c0_52, %c0_53] : memref<32x32xf32, #tpu.memory_space<vmem>>, vector<32x32xf32>
    %cst_54 = arith.constant dense<0.000000e+00> : vector<8x32xf32>
    %155 = tpu.matmul %153, %154, %cst_54 {dimension_numbers = #tpu.dot_dimension_numbers<[1], [0], [0], [1], [0, 0, 1, 1], [], []>} : vector<8x32xf32>, vector<32x32xf32>, vector<8x32xf32> -> vector<8x32xf32>
    %c0_55 = arith.constant 0 : index
    %c0_56 = arith.constant 0 : index
    %156 = vector.load %arg5[%c0_55, %c0_56] : memref<8x32xf32, #tpu.memory_space<vmem>>, vector<8x32xf32>
    tpu.vector_store %arg5[%c0_55, %c0_56], %155 {strides = array<i32>} : memref<8x32xf32, #tpu.memory_space<vmem>>, vector<8x32xf32>,
    return
  }
}

</mosaic_0001>

<bundles_post_ra>
// kernel: tpu_custom_call.1
= control target key start
LH: loop header
LB: loop body
LE: loop exit
PB: predicated region body
PF: predicated region fallthrough
CT: control target
= control target key end

     0   :  { %12 = vsyncpa [#allocation3], 0  ;;  %s2473_s0 = inlined_call_operand.hbm [shape: f32[8,32], index: 0, kind: input, shape index: {}]   ;;  %s2474_s1 = inlined_call_operand.hbm [shape: f32[32,32], index: 1, kind: input, shape index: {}]   ;;  %s2475_s2 = inlined_call_operand.hbm [shape: f32[32,32], index: 2, kind: input, shape index: {}]   ;;  %s2476_s3 = inlined_call_operand.hbm [shape: f32[32,32], index: 3, kind: input, shape index: {}]   ;;  %s2477_s4 = inlined_call_operand.hbm [shape: f32[32,32], index: 4, kind: input, shape index: {}]   ;;  %s2478_s5 = inlined_call_operand.hbm [shape: f32[8,32], index: 5, kind: output, shape index: {0}]   ;;  %s2479_s6 = inlined_call_operand.hbm [shape: f32[8,8,8], index: 6, kind: output, shape index: {1}]  }
   0x1   :  { %13 = vsyncpa [#allocation6], 0 }
   0x2   :  { %14 = vsyncpa [#allocation9], 0 }
   0x3   :  { %15 = vsyncpa [#allocation4], 0 }
   0x4   :  { %16 = vsyncpa [#allocation13], 0  ;;  %s2212_s21 = smov [#allocation5]  }
   0x5   :  { %s32_s22 = sshll.u32 %s2212_s21, 4  ;;  %s33_s22 = int_to_ptr.vmem [resolvable:$true] %s32_s22 }
   0x6   :  { %s2070_s23 = scalar_lea.vmem %s33_s22, 512  ;;  %p2075_p1 = scmp.lt.s32.totalorder %s33_s22, %s33_s22 }
   0x7   :  { %p2071_p0 = scmp.ne.s32.totalorder %s33_s22, %s2070_s23  ;;  %p2076_p2 = scmp.lt.s32.totalorder %s2070_s23, %s2070_s23 }
   0x9   :  { %p2077_p3 = por %p2076_p2, %p2075_p1 }
   0xb   :  { %p2078_p4 = pnand %p2077_p3, %p2071_p0 }
   0xd   :  { %2081 = shalt.err (!%p2078_p4)
}
   0xe   :  { %s2213_s24 = smov 128   ;;  %s2214_s25 = smov 8  }
   0xf   :  { %38 = dma.hbm_to_vmem [thread:$0]  %s2474_s1, 512, %s33_s22, [#allocation6], %s2213_s24, %s2213_s24, %s2214_s25  }
  0x10   :  { %s2215_s28 = smov [#allocation8]   ;;  %s2216_s30 = smov [#allocation2]  }
  0x11   :  { %s56_s29 = sshll.u32 %s2215_s28, 4  ;;  %s23_s7 = sshll.u32 %s2216_s30, 4  ;;  %s57_s29 = int_to_ptr.vmem [resolvable:$true] %s56_s29  ;;  %s24_s7 = int_to_ptr.vmem [resolvable:$true] %s23_s7 }
  0x12   :  { %s2090_s8 = scalar_lea.vmem %s57_s29, 512  ;;  %p2095_p6 = scmp.lt.s32.totalorder %s57_s29, %s57_s29 }
  0x13   :  { %p2091_p5 = scmp.ne.s32.totalorder %s57_s29, %s2090_s8  ;;  %p2096_p7 = scmp.lt.s32.totalorder %s2090_s8, %s2090_s8 }
  0x15   :  { %p2097_p8 = por %p2096_p7, %p2095_p6 }
  0x17   :  { %p2098_p9 = pnand %p2097_p8, %p2091_p5 }
  0x19   :  { %2101 = shalt.err (!%p2098_p9)
}
  0x1a   :  { %62 = dma.hbm_to_vmem [thread:$0]  %s2476_s3, 512, %s57_s29, [#allocation9], %s2213_s24, %s2213_s24, %s2214_s25  }
  0x1b   :  { %s2110_s1 = scalar_lea.vmem %s24_s7, 128  ;;  %p2115_p11 = scmp.lt.s32.totalorder %s24_s7, %s24_s7 }
  0x1c   :  { %p2111_p10 = scmp.ne.s32.totalorder %s24_s7, %s2110_s1  ;;  %p2116_p12 = scmp.lt.s32.totalorder %s2110_s1, %s2110_s1 }
  0x1e   :  { %p2117_p13 = por %p2116_p12, %p2115_p11 }
  0x20   :  { %p2118_p0 = pnand %p2117_p13, %p2111_p10 }
  0x22   :  { %2121 = shalt.err (!%p2118_p0)
}
  0x23   :  { %26 = dma.hbm_to_vmem [thread:$0]  %s2473_s0, 128, %s24_s7, [#allocation3]  }
  0x24   :  { %s2217_s13 = smov [#allocation7]   ;;  %s2218_s15 = smov [#allocation10]  }
  0x25   :  { %s44_s14 = sshll.u32 %s2217_s13, 4  ;;  %s68_s16 = sshll.u32 %s2218_s15, 4  ;;  %s45_s14 = int_to_ptr.vmem [resolvable:$true] %s44_s14  ;;  %s69_s16 = int_to_ptr.vmem [resolvable:$true] %s68_s16 }
  0x26   :  { %s2130_s17 = scalar_lea.vmem %s45_s14, 512  ;;  %p2135_p2 = scmp.lt.s32.totalorder %s45_s14, %s45_s14 }
  0x27   :  { %p2131_p1 = scmp.ne.s32.totalorder %s45_s14, %s2130_s17  ;;  %p2136_p3 = scmp.lt.s32.totalorder %s2130_s17, %s2130_s17 }
  0x29   :  { %p2137_p4 = por %p2136_p3, %p2135_p2 }
  0x2b   :  { %p2138_p5 = pnand %p2137_p4, %p2131_p1 }
  0x2d   :  { %2141 = shalt.err (!%p2138_p5)
}
  0x2e   :  { %50 = dma.hbm_to_vmem [thread:$0]  %s2475_s2, 512, %s45_s14, [#allocation6], %s2213_s24, %s2213_s24, %s2214_s25  }
  0x2f   :  { %s2150_s0 = scalar_lea.vmem %s69_s16, 512  ;;  %p2155_p7 = scmp.lt.s32.totalorder %s69_s16, %s69_s16 }
  0x30   :  { %p2151_p6 = scmp.ne.s32.totalorder %s69_s16, %s2150_s0  ;;  %p2156_p8 = scmp.lt.s32.totalorder %s2150_s0, %s2150_s0 }
  0x32   :  { %p2157_p9 = por %p2156_p8, %p2155_p7 }
  0x34   :  { %p2158_p10 = pnand %p2157_p9, %p2151_p6 }
  0x36   :  { %2161 = shalt.err (!%p2158_p10)
}
  0x37   :  { %74 = dma.hbm_to_vmem [thread:$0]  %s2477_s4, 512, %s69_s16, [#allocation9], %s2213_s24, %s2213_s24, %s2214_s25  }
  0x38   :  { %2202 = dma.done.wait [#allocation3], 128  }
  0x39   :  { %2203 = vsyncadd [#allocation3], 4294967168 }
  0x3a   :  { %2204 = dma.done.wait [#allocation6], 1024  }
  0x3b   :  { %2205 = vsyncadd [#allocation6], 4294966272 }
  0x3c   :  { %2206 = dma.done.wait [#allocation9], 1024  }
  0x3d   :  { %2207 = vsyncadd [#allocation9], 4294966272  ;;  %v2219_v0 = vmov 0.0   ;;  %vm2220_vm0 = vmmov 0   ;;  %v172_v1 = vld [vmem:[#allocation7 + $0x18] sm:$0xff]  ;;  %v171_v3 = vld [vmem:[#allocation7 + $0x10] sm:$0xff] }
  0x3e   :  { %1893 = vmatprep.subr.mxu1 %v2219_v0  ;;  %1882 = vmatprep.subr.mxu0 %v2219_v0  ;;  %v94_v2 = vld [vmem:[#allocation5 + $0x18] sm:$0xff]  ;;  %v93_v4 = vld [vmem:[#allocation5 + $0x10] sm:$0xff]  ;;  %v170_v5 = vld [vmem:[#allocation7 + $0x8] sm:$0xff]  ;;  %vm95_vm1 = vcmask 261120   ;;  %vm317_vm2 = vcmask 31744   ;;  %s2221_s2 = smov 124  }
  0x3f   :  { %1901 = vmatprep.mubr.msk.f32.mxu1 %vm2220_vm0, %v2219_v0  ;;  %1890 = vmatprep.mubr.msk.f32.mxu0 %vm2220_vm0, %v2219_v0  ;;  %v92_v6 = vld [vmem:[#allocation5 + $0x8] sm:$0xff]  ;;  %v169_v7 = vld [vmem:[#allocation7] sm:$0xff]  ;;  %v90_v9 = vld [vmem:[#allocation2] sm:$0xff]  ;;  %s2222_s4 = smov 120   ;;  %s2223_s21 = smov 116   ;;  %vm395_vm3 = vcmask 64512  }
  0x40   :  { %1894 = vmatpush3.msra.mxu1 %v172_v1  ;;  %1883 = vmatpush3.msra.mxu0 %v94_v2  ;;  %v91_v8 = vld [vmem:[#allocation5] sm:$0xff]  ;;  %s2224_s22 = smov 112   ;;  %s2225_s23 = smov 108   ;;  %v246_v14 = vld [vmem:[#allocation8 + $0x18] sm:$0xff]  ;;  %v245_v15 = vld [vmem:[#allocation8 + $0x10] sm:$0xff]  ;;  %vm1681_vm4 = vcmask 97280  }
  0x41   :  { %1895 = vmatprep.subr.mxu1 %v2219_v0  ;;  %1884 = vmatprep.subr.mxu0 %v2219_v0  ;;  %s2226_s26 = smov 104   ;;  %s2227_s27 = smov 100   ;;  %v244_v16 = vld [vmem:[#allocation8 + $0x8] sm:$0xff]  ;;  %v243_v17 = vld [vmem:[#allocation8] sm:$0xff]  ;;  %vm1683_vm5 = vcmask 130048   ;;  %vm1685_vm6 = vcmask 162816  }
  0x42   :  { %1896 = vmatpush3.msra.mxu1 %v171_v3  ;;  %1885 = vmatpush3.msra.mxu0 %v93_v4  ;;  %s2228_s28 = smov 4   ;;  %s2229_s29 = smov 12   ;;  %vm1687_vm7 = vcmask 195584   ;;  %vm1689_vm8 = vcmask 228352  }
  0x43   :  { %1897 = vmatprep.subr.mxu1 %v2219_v0  ;;  %1886 = vmatprep.subr.mxu0 %v2219_v0  ;;  %s2230_s30 = smov 16   ;;  %s2231_s7 = smov 20  }
  0x44   :  { %1898 = vmatpush3.msra.mxu1 %v170_v5  ;;  %1887 = vmatpush3.msra.mxu0 %v92_v6  ;;  %s2232_s8 = smov 24   ;;  %s2233_s9 = smov 28  }
  0x45   :  { %1899 = vmatprep.subr.mxu1 %v2219_v0  ;;  %1888 = vmatprep.subr.mxu0 %v2219_v0  ;;  %s2234_s10 = smov [#allocation12]  }
  0x46   :  { %1900 = vmatpush3.msra.mxu1 %v169_v7  ;;  %1889 = vmatpush3.msra.mxu0 %v91_v8  ;;  %s1784_s1 = sshll.u32 %s2234_s10, 4  ;;  %s1785_s1 = int_to_ptr.vmem [resolvable:$true] %s1784_s1 }
  0x47   :  { %1902 = vmatmul.mubr.msk.f32.vlgmr.msra.gmra.mxu1 %vm95_vm1, %v90_v9  ;;  %1891 = vmatmul.mubr.msk.f32.vlgmr.msra.gmra.mxu0 %vm95_vm1, %v90_v9  ;;  %s2162_s11 = scalar_lea.vmem %s1785_s1, 1024  ;;  %p2167_p12 = scmp.lt.s32.totalorder %s1785_s1, %s1785_s1 }
  0x48   :  { %1915 = vmatprep.subr.mxu1 %v2219_v0  ;;  %1917 = vmatprep.mubr.msk.f32.mxu1 %vm2220_vm0, %v2219_v0  ;;  %p2163_p11 = scmp.ne.s32.totalorder %s1785_s1, %s2162_s11  ;;  %p2168_p13 = scmp.lt.s32.totalorder %s2162_s11, %s2162_s11 }
  0x49   :  { %1904 = vmatprep.subr.mxu0 %v2219_v0  ;;  %1912 = vmatprep.mubr.msk.f32.mxu0 %vm2220_vm0, %v2219_v0 }
  0x4a   :  { %1905 = vmatpush3.msra.mxu0 %v246_v14  ;;  %p2169_p0 = por %p2168_p13, %p2167_p12 }
  0x4b   :  { %1906 = vmatprep.subr.mxu0 %v2219_v0 }
  0x4c   :  { %1907 = vmatpush3.msra.mxu0 %v245_v15  ;;  %p2170_p1 = pnand %p2169_p0, %p2163_p11 }
  0x4d   :  { %1908 = vmatprep.subr.mxu0 %v2219_v0 }
  0x4e   :  { %1909 = vmatpush3.msra.mxu0 %v244_v16 }
  0x4f   :  { %1910 = vmatprep.subr.mxu0 %v2219_v0 }
  0x50   :  { %1911 = vmatpush3.msra.mxu0 %v243_v17 }
  0x51   :  { %1913 = vmatmul.mubr.msk.f32.vlgmr.msra.gmra.mxu0 %vm95_vm1, %v90_v9  ;;  %1935 = vmatprep.subr.mxu0 %v2219_v0 }
  0x52   :  { %1937 = vmatprep.mubr.msk.f32.mxu0 %vm2220_vm0, %v2219_v0 }
 0x107   :  { %v239_v10 = vpop.f32.mrf.mxu1  ;;  %v165_v11 = vpop.f32.mrf.mxu0 }
 0x108   :  { %482 = vrot.lane.b32.xlu1 %v239_v10, %s2221_s2  ;;  %1916 = vmatpush3.xpose.msk.msra.mxu1 %vm317_vm2, %v239_v10 }
 0x109   :  { %v1903_v12 = vpop.f32.mrf.mxu1  ;;  %v1892_v13 = vpop.f32.mrf.mxu0  ;;  %1920 = vmatprep.subr.mxu1 %v2219_v0 }
 0x10b   :  { %1918 = vmatmul.mubr.msk.f32.vlgmr.msra.gmra.mxu1 %vm317_vm2, %v165_v11 }
 0x10c   :  { %480 = vrot.lane.b32.xlu1 %v165_v11, %s2221_s2  ;;  %1922 = vmatprep.mubr.msk.f32.mxu1 %vm2220_vm0, %v2219_v0 }
 0x110   :  { %647 = vrot.lane.b32.xlu1 %v165_v11, %s2222_s4 }
 0x111   :  { %v2343_v27 = vpop.f32.mrf.mxu0 }
 0x112   :  { %1921 = vmatpush3.msra.mxu1 %v2343_v27 }
 0x113   :  { %1925 = vmatprep.subr.mxu1 %v2219_v0  ;;  %v1914_v28 = vpop.f32.mrf.mxu0 }
 0x114   :  { %815 = vrot.lane.b32.xlu1 %v239_v10, %s2223_s21 }
 0x118   :  { %813 = vrot.lane.b32.xlu1 %v165_v11, %s2223_s21 }
 0x11c   :  { %981 = vrot.lane.b32.xlu1 %v239_v10, %s2224_s22 }
 0x120   :  { %979 = vrot.lane.b32.xlu1 %v165_v11, %s2224_s22 }
 0x124   :  { %1147 = vrot.lane.b32.xlu1 %v239_v10, %s2225_s23 }
 0x128   :  { %1313 = vrot.lane.b32.xlu1 %v239_v10, %s2226_s26 }
 0x12c   :  { %1479 = vrot.lane.b32.xlu1 %v239_v10, %s2227_s27 }
 0x17a   :  { %v483_v29 = vpop.permute.xlu1 %482 }
 0x17e   :  { %v481_v30 = vpop.permute.xlu1 %480 }
 0x182   :  { %v648_v31 = vpop.permute.xlu1 %647 }
 0x186   :  { %v816_v32 = vpop.permute.xlu1 %815 }
 0x18a   :  { %v814_v33 = vpop.permute.xlu1 %813 }
 0x18e   :  { %v982_v34 = vpop.permute.xlu1 %981 }
 0x192   :  { %v980_v37 = vpop.permute.xlu1 %979 }
 0x196   :  { %v1148_v38 = vpop.permute.xlu1 %1147 }
 0x19a   :  { %v1314_v42 = vpop.permute.xlu1 %1313 }
 0x19e   :  { %v1480_v44 = vpop.permute.xlu1 %1479 }
 0x1cb   :  { %v390_v18 = vpop.f32.mrf.mxu1 }
 0x1cc   :  { %v394_v19 = vmul.f32 0.5, %v390_v18 }
 0x1cd   :  { %v1919_v20 = vpop.f32.mrf.mxu1 }
 0x1ce   :  { %v396_v21 = vsel %vm395_vm3, %v394_v19, -inf }
 0x1cf   :  { %397 = vmax.xlane.f32.xlu0 %v396_v21 }
 0x258   :  { %v398_v22 = vpop.xlane.xlu0 %397 }
 0x259   :  { %v399_v23 = vsub.f32 %v394_v19, %v398_v22 }
 0x25b   :  { %v400_v24 = vmul.f32 1.442695, %v399_v23 }
 0x25d   :  { %2030 = vpow2.f32 %v400_v24 }
 0x26a   :  { %v2031_v25 = vpop.eup %2030 }
 0x26b   :  { %v402_v26 = vsel %vm395_vm3, %v2031_v25, 0.0 }
 0x26c   :  { %403 = vadd.xlane.f32.xlu0 %v402_v26 }
 0x282   :  { %649 = vrot.lane.b32.xlu0 %v239_v10, %s2222_s4 }
 0x286   :  { %1145 = vrot.lane.b32.xlu0 %v165_v11, %s2225_s23 }
 0x28a   :  { %1311 = vrot.lane.b32.xlu0 %v165_v11, %s2226_s26 }
 0x28e   :  { %1477 = vrot.lane.b32.xlu0 %v165_v11, %s2227_s27 }
 0x2f5   :  { %v404_v35 = vpop.xlane.xlu0 %403 }
 0x2f6   :  { %2032 = vrcp.f32 %v404_v35 }
 0x2f9   :  { %v650_v36 = vpop.permute.xlu0 %649 }
 0x2fa   :  { %1936 = vmatpush3.xpose.msk.msra.mxu0 %vm317_vm2, %v650_v36 }
 0x2fb   :  { %1945 = vmatprep.subr.mxu0 %v2219_v0 }
 0x2fd   :  { %1938 = vmatmul.mubr.msk.f32.vlgmr.msra.gmra.mxu0 %vm317_vm2, %v648_v31  ;;  %v1146_v40 = vpop.permute.xlu0 %1145 }
 0x2fe   :  { %1946 = vmatpush3.xpose.msk.msra.mxu0 %vm317_vm2, %v816_v32  ;;  %1947 = vmatprep.mubr.msk.f32.mxu0 %vm2220_vm0, %v2219_v0 }
 0x2ff   :  { %1955 = vmatprep.subr.mxu0 %v2219_v0 }
 0x301   :  { %1948 = vmatmul.mubr.msk.f32.vlgmr.msra.gmra.mxu0 %vm317_vm2, %v814_v33  ;;  %v1312_v43 = vpop.permute.xlu0 %1311 }
 0x302   :  { %1956 = vmatpush3.xpose.msk.msra.mxu0 %vm317_vm2, %v982_v34  ;;  %1957 = vmatprep.mubr.msk.f32.mxu0 %vm2220_vm0, %v2219_v0 }
 0x303   :  { %v2033_v39 = vpop.eup %2032  ;;  %1965 = vmatprep.subr.mxu0 %v2219_v0 }
 0x304   :  { %v406_v41 = vmul.f32 %v2033_v39, %v2031_v25 }
 0x305   :  { %1958 = vmatmul.mubr.msk.f32.vlgmr.msra.gmra.mxu0 %vm317_vm2, %v980_v37  ;;  %v1478_v45 = vpop.permute.xlu0 %1477 }
 0x306   :  { %1923 = vmatmul.mubr.msk.f32.vlgmr.msra.gmra.mxu1 %vm395_vm3, %v406_v41  ;;  %1643 = vst.msk [vmem:[#allocation12] sm:$0xff] %vm395_vm3, %v406_v41  ;;  %1966 = vmatpush3.xpose.msk.msra.mxu0 %vm317_vm2, %v1148_v38 }
 0x307   :  { %1926 = vmatpush3.xpose.msk.msra.mxu1 %vm317_vm2, %v483_v29  ;;  %1967 = vmatprep.mubr.msk.f32.mxu0 %vm2220_vm0, %v2219_v0 }
 0x308   :  { %1927 = vmatprep.mubr.msk.f32.mxu1 %vm2220_vm0, %v2219_v0  ;;  %1975 = vmatprep.subr.mxu0 %v2219_v0 }
 0x309   :  { %1968 = vmatmul.mubr.msk.f32.vlgmr.msra.gmra.mxu0 %vm317_vm2, %v1146_v40  ;;  %1930 = vmatprep.subr.mxu1 %v2219_v0 }
 0x30a   :  { %1928 = vmatmul.mubr.msk.f32.vlgmr.msra.gmra.mxu1 %vm317_vm2, %v481_v30  ;;  %1976 = vmatpush3.xpose.msk.msra.mxu0 %vm317_vm2, %v1314_v42 }
 0x30b   :  { %1977 = vmatprep.mubr.msk.f32.mxu0 %vm2220_vm0, %v2219_v0  ;;  %1985 = vmatprep.subr.mxu0 %v2219_v0 }
 0x30c   :  { %1932 = vmatprep.mubr.msk.f32.mxu1 %vm2220_vm0, %v2219_v0 }
 0x30d   :  { %1978 = vmatmul.mubr.msk.f32.vlgmr.msra.gmra.mxu0 %vm317_vm2, %v1312_v43 }
 0x30e   :  { %1986 = vmatpush3.xpose.msk.msra.mxu0 %vm317_vm2, %v1480_v44  ;;  %1987 = vmatprep.mubr.msk.f32.mxu0 %vm2220_vm0, %v2219_v0 }
 0x30f   :  { %1995 = vmatprep.subr.mxu0 %v2219_v0 }
 0x311   :  { %1988 = vmatmul.mubr.msk.f32.vlgmr.msra.gmra.mxu0 %vm317_vm2, %v1478_v45 }
 0x312   :  { %2003 = vmatprep.mubr.msk.f32.mxu0 %vm2220_vm0, %v2219_v0 }
 0x3bd   :  { %v721_v46 = vpop.f32.mrf.mxu0 }
 0x3be   :  { %v725_v47 = vmul.f32 0.5, %v721_v46 }
 0x3bf   :  { %v1939_v48 = vpop.f32.mrf.mxu0 }
 0x3c0   :  { %v726_v49 = vsel %vm395_vm3, %v725_v47, -inf }
 0x3c1   :  { %727 = vmax.xlane.f32.xlu0 %v726_v49  ;;  %v887_v50 = vpop.f32.mrf.mxu0 }
 0x3c2   :  { %v891_v51 = vmul.f32 0.5, %v887_v50 }
 0x3c3   :  { %v1949_v52 = vpop.f32.mrf.mxu0 }
 0x3c4   :  { %v892_v53 = vsel %vm395_vm3, %v891_v51, -inf }
 0x3c5   :  { %893 = vmax.xlane.f32.xlu0 %v892_v53  ;;  %v1053_v54 = vpop.f32.mrf.mxu0 }
 0x3c6   :  { %v2391_v55 = vpop.f32.mrf.mxu1  ;;  %v1057_v2 = vmul.f32 0.5, %v1053_v54 }
 0x3c7   :  { %v1959_v56 = vpop.f32.mrf.mxu0 }
 0x3c8   :  { %v1924_v57 = vpop.f32.mrf.mxu1  ;;  %v1058_v8 = vsel %vm395_vm3, %v1057_v2, -inf }
 0x3c9   :  { %v1219_v58 = vpop.f32.mrf.mxu0 }
 0x3ca   :  { %v1223_v59 = vmul.f32 0.5, %v1219_v58  ;;  %v554_v60 = vpop.f32.mrf.mxu1 }
 0x3cb   :  { %v2393_v61 = vmul.f32 0.5, %v554_v60  ;;  %v1969_v62 = vpop.f32.mrf.mxu0 }
 0x3cc   :  { %v1929_v63 = vpop.f32.mrf.mxu1  ;;  %v1224_v1 = vsel %vm395_vm3, %v1223_v59, -inf }
 0x3cd   :  { %1225 = vmax.xlane.f32.xlu0 %v1224_v1  ;;  %v1385_v3 = vpop.f32.mrf.mxu0  ;;  %v559_v4 = vsel %vm395_vm3, %v2393_v61, -inf }
 0x3ce   :  { %560 = vmax.xlane.f32.xlu1 %v559_v4  ;;  %v1389_v6 = vmul.f32 0.5, %v1385_v3 }
 0x3cf   :  { %v1979_v5 = vpop.f32.mrf.mxu0 }
 0x3d0   :  { %v1390_v12 = vsel %vm395_vm3, %v1389_v6, -inf }
 0x3d1   :  { %v1551_v7 = vpop.f32.mrf.mxu0 }
 0x3d2   :  { %v1555_v9 = vmul.f32 0.5, %v1551_v7  ;;  %1059 = vmax.xlane.f32.xlu1 %v1058_v8 }
 0x3d3   :  { %v1989_v10 = vpop.f32.mrf.mxu0 }
 0x3d4   :  { %v1556_v11 = vsel %vm395_vm3, %v1555_v9, -inf }
 0x3d5   :  { %1557 = vmax.xlane.f32.xlu0 %v1556_v11 }
 0x3d6   :  { %1391 = vmax.xlane.f32.xlu1 %v1390_v12 }
 0x44a   :  { %v728_v13 = vpop.xlane.xlu0 %727 }
 0x44b   :  { %v729_v14 = vsub.f32 %v725_v47, %v728_v13 }
 0x44d   :  { %v730_v15 = vmul.f32 1.442695, %v729_v14 }
 0x44e   :  { %v894_v16 = vpop.xlane.xlu0 %893 }
 0x44f   :  { %2034 = vpow2.f32 %v730_v15  ;;  %v895_v17 = vsub.f32 %v891_v51, %v894_v16 }
 0x451   :  { %v896_v18 = vmul.f32 1.442695, %v895_v17  ;;  %v1694_v17 = vld [vmem:[#allocation10 + $0x18] sm:$0xff] }
 0x452   :  { %1996 = vmatpush3.msra.mxu0 %v1694_v17 }
 0x453   :  { %2036 = vpow2.f32 %v896_v18  ;;  %1997 = vmatprep.subr.mxu0 %v2219_v0 }
 0x456   :  { %v1226_v19 = vpop.xlane.xlu0 %1225 }
 0x457   :  { %v1227_v20 = vsub.f32 %v1223_v59, %v1226_v19  ;;  %v561_v21 = vpop.xlane.xlu1 %560 }
 0x458   :  { %v562_v45 = vsub.f32 %v2393_v61, %v561_v21  ;;  %v1692_v21 = vld [vmem:[#allocation10 + $0x8] sm:$0xff] }
 0x459   :  { %v1228_v22 = vmul.f32 1.442695, %v1227_v20  ;;  %v1693_v20 = vld [vmem:[#allocation10 + $0x10] sm:$0xff] }
 0x45a   :  { %v563_v46 = vmul.f32 1.442695, %v562_v45  ;;  %1998 = vmatpush3.msra.mxu0 %v1693_v20 }
 0x45b   :  { %2038 = vpow2.f32 %v1228_v22  ;;  %v1060_v23 = vpop.xlane.xlu1 %1059  ;;  %1999 = vmatprep.subr.mxu0 %v2219_v0 }
 0x45c   :  { %v2035_v24 = vpop.eup %2034  ;;  %v1061_v25 = vsub.f32 %v1057_v2, %v1060_v23  ;;  %2000 = vmatpush3.msra.mxu0 %v1692_v21 }
 0x45d   :  { %v732_v26 = vsel %vm395_vm3, %v2035_v24, 0.0  ;;  %2001 = vmatprep.subr.mxu0 %v2219_v0 }
 0x45e   :  { %v1062_v28 = vmul.f32 1.442695, %v1061_v25  ;;  %733 = vadd.xlane.f32.xlu0 %v732_v26  ;;  %v1558_v29 = vpop.xlane.xlu0 %1557 }
 0x45f   :  { %v1559_v30 = vsub.f32 %v1555_v9, %v1558_v29  ;;  %v1392_v31 = vpop.xlane.xlu1 %1391 }
 0x460   :  { %v2037_v32 = vpop.eup %2036  ;;  %2040 = vpow2.f32 %v1062_v28  ;;  %v1393_v33 = vsub.f32 %v1389_v6, %v1392_v31 }
 0x461   :  { %v1560_v34 = vmul.f32 1.442695, %v1559_v30  ;;  %v898_v35 = vsel %vm395_vm3, %v2037_v32, 0.0 }
 0x462   :  { %v1394_v36 = vmul.f32 1.442695, %v1393_v33  ;;  %899 = vadd.xlane.f32.xlu1 %v898_v35 }
 0x463   :  { %2042 = vpow2.f32 %v1560_v34 }
 0x464   :  { %2044 = vpow2.f32 %v1394_v36 }
 0x465   :  { %2046 = vpow2.f32 %v563_v46 }
 0x468   :  { %v2039_v37 = vpop.eup %2038 }
 0x469   :  { %v1230_v38 = vsel %vm395_vm3, %v2039_v37, 0.0 }
 0x46a   :  { %1231 = vadd.xlane.f32.xlu1 %v1230_v38 }
 0x46d   :  { %v2041_v39 = vpop.eup %2040 }
 0x46e   :  { %v1064_v40 = vsel %vm395_vm3, %v2041_v39, 0.0 }
 0x46f   :  { %1065 = vadd.xlane.f32.xlu0 %v1064_v40 }
 0x470   :  { %v2043_v41 = vpop.eup %2042 }
 0x471   :  { %v2045_v42 = vpop.eup %2044  ;;  %v1562_v43 = vsel %vm395_vm3, %v2043_v41, 0.0 }
 0x472   :  { %1563 = vadd.xlane.f32.xlu1 %v1562_v43  ;;  %v1396_v44 = vsel %vm395_vm3, %v2045_v42, 0.0  ;;  %v2047_v47 = vpop.eup %2046 }
 0x473   :  { %1397 = vadd.xlane.f32.xlu0 %v1396_v44  ;;  %v565_v48 = vsel %vm395_vm3, %v2047_v47, 0.0 }
 0x483   :  { %737 = vrot.lane.b32.xlu1 %v2343_v27, %s2222_s4 }
 0x489   :  { %571 = vrot.lane.b32.xlu0 %v2343_v27, %s2221_s2 }
 0x48d   :  { %1069 = vrot.lane.b32.xlu0 %v2343_v27, %s2224_s22 }
 0x491   :  { %1401 = vrot.lane.b32.xlu0 %v2343_v27, %s2226_s26 }
 0x4a7   :  { %566 = vadd.xlane.f32.xlu1 %v565_v48 }
 0x4b8   :  { %903 = vrot.lane.b32.xlu1 %v2343_v27, %s2223_s21 }
 0x4bc   :  { %1235 = vrot.lane.b32.xlu1 %v2343_v27, %s2225_s23 }
 0x4c0   :  { %1567 = vrot.lane.b32.xlu1 %v2343_v27, %s2227_s27 }
 0x4e7   :  { %v734_v49 = vpop.xlane.xlu0 %733 }
 0x4e8   :  { %2048 = vrcp.f32 %v734_v49 }
 0x4eb   :  { %v900_v50 = vpop.xlane.xlu1 %899 }
 0x4ec   :  { %2050 = vrcp.f32 %v900_v50 }
 0x4f3   :  { %v1232_v51 = vpop.xlane.xlu1 %1231 }
 0x4f4   :  { %2052 = vrcp.f32 %v1232_v51 }
 0x4f5   :  { %v2049_v52 = vpop.eup %2048 }
 0x4f6   :  { %v736_v53 = vmul.f32 %v2049_v52, %v2035_v24  ;;  %v1691_v24 = vld [vmem:[#allocation10] sm:$0xff] }
 0x4f7   :  { %2002 = vmatpush3.msra.mxu0 %v1691_v24 }
 0x4f8   :  { %v1066_v54 = vpop.xlane.xlu0 %1065  ;;  %1645 = vst.msk [vmem:[#allocation12 + $0x10] sm:$0xff] %vm395_vm3, %v736_v53 }
 0x4f9   :  { %v2051_v56 = vpop.eup %2050  ;;  %2054 = vrcp.f32 %v1066_v54 }
 0x4fa   :  { %v902_v57 = vmul.f32 %v2051_v56, %v2037_v32 }
 0x4fb   :  { %v1564_v58 = vpop.xlane.xlu1 %1563 }
 0x4fc   :  { %2056 = vrcp.f32 %v1564_v58  ;;  %v1398_v59 = vpop.xlane.xlu0 %1397  ;;  %1646 = vst.msk [vmem:[#allocation12 + $0x18] sm:$0xff] %vm395_vm3, %v902_v57 }
 0x4fd   :  { %2058 = vrcp.f32 %v1398_v59 }
 0x4ff   :  { %v738_v5 = vpop.permute.xlu1 %737 }
 0x500   :  { %v572_v27 = vpop.permute.xlu0 %571 }
 0x501   :  { %v2053_v60 = vpop.eup %2052  ;;  %1931 = vmatpush3.msra.mxu1 %v572_v27 }
 0x502   :  { %1940 = vmatprep.subr.mxu1 %v2219_v0  ;;  %v1234_v61 = vmul.f32 %v2053_v60, %v2039_v37 }
 0x504   :  { %1648 = vst.msk [vmem:[#allocation12 + $0x28] sm:$0xff] %vm395_vm3, %v1234_v61  ;;  %v1070_v10 = vpop.permute.xlu0 %1069 }
 0x506   :  { %v2055_v62 = vpop.eup %2054 }
 0x507   :  { %v1068_v63 = vmul.f32 %v2055_v62, %v2041_v39 }
 0x508   :  { %v1402_v12 = vpop.permute.xlu0 %1401 }
 0x509   :  { %v2057_v1 = vpop.eup %2056  ;;  %1647 = vst.msk [vmem:[#allocation12 + $0x20] sm:$0xff] %vm395_vm3, %v1068_v63 }
 0x50a   :  { %v2059_v2 = vpop.eup %2058  ;;  %v1566_v3 = vmul.f32 %v2057_v1, %v2043_v41 }
 0x50b   :  { %v1400_v4 = vmul.f32 %v2059_v2, %v2045_v42 }
 0x50c   :  { %1650 = vst.msk [vmem:[#allocation12 + $0x38] sm:$0xff] %vm395_vm3, %v1566_v3 }
 0x50d   :  { %1649 = vst.msk [vmem:[#allocation12 + $0x30] sm:$0xff] %vm395_vm3, %v1400_v4 }
 0x530   :  { %v567_v6 = vpop.xlane.xlu1 %566 }
 0x531   :  { %2060 = vrcp.f32 %v567_v6 }
 0x534   :  { %v904_v9 = vpop.permute.xlu1 %903 }
 0x538   :  { %v1236_v11 = vpop.permute.xlu1 %1235 }
 0x53c   :  { %v1568_v13 = vpop.permute.xlu1 %1567 }
 0x53e   :  { %v2061_v7 = vpop.eup %2060 }
 0x53f   :  { %v569_v8 = vmul.f32 %v2061_v7, %v2047_v47 }
 0x541   :  { %1933 = vmatmul.mubr.msk.f32.vlgmr.msra.gmra.mxu1 %vm395_vm3, %v569_v8  ;;  %1644 = vst.msk [vmem:[#allocation12 + $0x8] sm:$0xff] %vm395_vm3, %v569_v8 }
 0x542   :  { %1941 = vmatpush3.msra.mxu1 %v738_v5  ;;  %1942 = vmatprep.mubr.msk.f32.mxu1 %vm2220_vm0, %v2219_v0 }
 0x543   :  { %1950 = vmatprep.subr.mxu1 %v2219_v0 }
 0x545   :  { %1943 = vmatmul.mubr.msk.f32.vlgmr.msra.gmra.mxu1 %vm395_vm3, %v736_v53 }
 0x546   :  { %1951 = vmatpush3.msra.mxu1 %v904_v9  ;;  %1952 = vmatprep.mubr.msk.f32.mxu1 %vm2220_vm0, %v2219_v0 }
 0x547   :  { %1960 = vmatprep.subr.mxu1 %v2219_v0 }
 0x549   :  { %1953 = vmatmul.mubr.msk.f32.vlgmr.msra.gmra.mxu1 %vm395_vm3, %v902_v57 }
 0x54a   :  { %1961 = vmatpush3.msra.mxu1 %v1070_v10  ;;  %1962 = vmatprep.mubr.msk.f32.mxu1 %vm2220_vm0, %v2219_v0 }
 0x54b   :  { %1970 = vmatprep.subr.mxu1 %v2219_v0 }
 0x54d   :  { %1963 = vmatmul.mubr.msk.f32.vlgmr.msra.gmra.mxu1 %vm395_vm3, %v1068_v63 }
 0x54e   :  { %1971 = vmatpush3.msra.mxu1 %v1236_v11  ;;  %1972 = vmatprep.mubr.msk.f32.mxu1 %vm2220_vm0, %v2219_v0 }
 0x54f   :  { %1980 = vmatprep.subr.mxu1 %v2219_v0 }
 0x551   :  { %1973 = vmatmul.mubr.msk.f32.vlgmr.msra.gmra.mxu1 %vm395_vm3, %v1234_v61 }
 0x552   :  { %1981 = vmatpush3.msra.mxu1 %v1402_v12  ;;  %1982 = vmatprep.mubr.msk.f32.mxu1 %vm2220_vm0, %v2219_v0 }
 0x553   :  { %1990 = vmatprep.subr.mxu1 %v2219_v0 }
 0x555   :  { %1983 = vmatmul.mubr.msk.f32.vlgmr.msra.gmra.mxu1 %vm395_vm3, %v1400_v4 }
 0x556   :  { %1991 = vmatpush3.msra.mxu1 %v1568_v13  ;;  %1992 = vmatprep.mubr.msk.f32.mxu1 %vm2220_vm0, %v2219_v0 }
 0x559   :  { %1993 = vmatmul.mubr.msk.f32.vlgmr.msra.gmra.mxu1 %vm395_vm3, %v1566_v3 }
 0x601   :  { %v643_v14 = vpop.f32.mrf.mxu1 }
 0x602   :  { %1652 = vrot.lane.b32.xlu0 %v643_v14, %s2228_s28 }
 0x603   :  { %v1934_v15 = vpop.f32.mrf.mxu1 }
 0x605   :  { %v809_v16 = vpop.f32.mrf.mxu1 }
 0x606   :  { %1656 = vrot.lane.b32.xlu1 %v809_v16, %s2214_s25 }
 0x607   :  { %v1944_v18 = vpop.f32.mrf.mxu1 }
 0x609   :  { %v975_v19 = vpop.f32.mrf.mxu1 }
 0x60a   :  { %1660 = vrot.lane.b32.xlu0 %v975_v19, %s2229_s29 }
 0x60b   :  { %v1954_v22 = vpop.f32.mrf.mxu1 }
 0x60d   :  { %v1141_v23 = vpop.f32.mrf.mxu1 }
 0x60e   :  { %1664 = vrot.lane.b32.xlu1 %v1141_v23, %s2230_s30 }
 0x60f   :  { %v1964_v25 = vpop.f32.mrf.mxu1 }
 0x611   :  { %v1307_v26 = vpop.f32.mrf.mxu1 }
 0x612   :  { %1668 = vrot.lane.b32.xlu0 %v1307_v26, %s2231_s7 }
 0x613   :  { %v1974_v28 = vpop.f32.mrf.mxu1 }
 0x615   :  { %v1473_v29 = vpop.f32.mrf.mxu1 }
 0x616   :  { %1672 = vrot.lane.b32.xlu1 %v1473_v29, %s2232_s8 }
 0x617   :  { %v1984_v30 = vpop.f32.mrf.mxu1 }
 0x619   :  { %v1639_v31 = vpop.f32.mrf.mxu1 }
 0x61a   :  { %1676 = vrot.lane.b32.xlu0 %v1639_v31, %s2233_s9 }
 0x61b   :  { %v1994_v32 = vpop.f32.mrf.mxu1 }
 0x674   :  { %v1653_v33 = vpop.permute.xlu0 %1652 }
 0x675   :  { %v1679_v36 = vsel %vm317_vm2, %v2391_v55, %v1653_v33 }
 0x678   :  { %v1657_v34 = vpop.permute.xlu1 %1656 }
 0x679   :  { %v1680_v37 = vsel %vm395_vm3, %v1679_v36, %v1657_v34 }
 0x67c   :  { %v1661_v0 = vpop.permute.xlu0 %1660 }
 0x67d   :  { %v1682_v39 = vsel %vm1681_vm4, %v1680_v37, %v1661_v0 }
 0x680   :  { %v1665_v35 = vpop.permute.xlu1 %1664 }
 0x681   :  { %v1684_v41 = vsel %vm1683_vm5, %v1682_v39, %v1665_v35 }
 0x684   :  { %v1669_v38 = vpop.permute.xlu0 %1668 }
 0x685   :  { %v1686_v42 = vsel %vm1685_vm6, %v1684_v41, %v1669_v38 }
 0x688   :  { %v1673_v40 = vpop.permute.xlu1 %1672 }
 0x689   :  { %v1688_v43 = vsel %vm1687_vm7, %v1686_v42, %v1673_v40 }
 0x68c   :  { %v1677_v44 = vpop.permute.xlu0 %1676 }
 0x68d   :  { %v1690_v45 = vsel %vm1689_vm8, %v1688_v43, %v1677_v44 }
 0x68e   :  { %2004 = vmatmul.mubr.msk.f32.vlgmr.msra.gmra.mxu0 %vm95_vm1, %v1690_v45 }
 0x68f   :  { %2173 = shalt.err (!%p2170_p1)
}
 0x690   :  { %1790 = dma.vmem_to_hbm [thread:$0]  %s1785_s1, 1024, %s2479_s6, [#allocation13], %s2213_s24, %s2213_s24, %s2214_s25  }
 0x691   :  { %s2235_s14 = smov [#allocation11]  }
 0x692   :  { %s1775_s15 = sshll.u32 %s2235_s14, 4  ;;  %s1776_s15 = int_to_ptr.vmem [resolvable:$true] %s1775_s15 }
 0x693   :  { %s2182_s16 = scalar_lea.vmem %s1776_s15, 128  ;;  %p2187_p3 = scmp.lt.s32.totalorder %s1776_s15, %s1776_s15 }
 0x694   :  { %p2183_p2 = scmp.ne.s32.totalorder %s1776_s15, %s2182_s16  ;;  %p2188_p4 = scmp.lt.s32.totalorder %s2182_s16, %s2182_s16 }
 0x696   :  { %p2189_p5 = por %p2188_p4, %p2187_p3 }
 0x698   :  { %p2190_p6 = pnand %p2189_p5, %p2183_p2 }
 0x74e   :  { %v1764_v55 = vpop.f32.mrf.mxu0 }
 0x74f   :  { %1768 = vst.msk [vmem:[#allocation11] sm:$0xff] %vm95_vm1, %v1764_v55 }
 0x750   :  { %v2005_v46 = vpop.f32.mrf.mxu0 }
 0x751   :  { %2193 = shalt.err (!%p2190_p6)
}
 0x752   :  { %1778 = dma.vmem_to_hbm [thread:$0]  %s1776_s15, 128, %s2478_s5, [#allocation4]  }
 0x753   :  { %2208 = dma.done.wait [#allocation4], 128  }
 0x754   :  { %2209 = vsyncadd [#allocation4], 4294967168 }
 0x755   :  { %2210 = dma.done.wait [#allocation13], 1024  }
 0x756   :  { %2211 = vsyncadd [#allocation13], 4294966272 }
 0x757   :  { %1797 = vsyncpa [#allocation3], 1 }
 0x758   :  { %1798 = vsyncpa [#allocation6], 1 }
 0x759   :  { %1799 = vsyncpa [#allocation9], 1 }
 0x75a   :  { %1800 = vsyncpa [#allocation4], 1 }
 0x75b   :  { %1801 = vsyncpa [#allocation13], 1 }

</bundles_post_ra>
